<compile_context>
chip_gen: v6e
topology: v6e:2x2x1
jax: 0.10.0
libtpu: 0.0.40
codegen_flags: <defaults>
</compile_context>

<pallas_src>
import math

import jax
import jax.numpy as jnp
from jax.experimental import pallas as pl
from jax.experimental.pallas import tpu as pltpu


_LANES = 128
_MAX_BLOCK_ROWS = 1024   # 1024 x 128 x 4B = 512 KiB per f32 buffer per input
_NUM_CORE_SLOTS = 2      # leading "parallel" axis; uses both v7x TCs, no-op on v5e/v6e


def _round_up(a: int, b: int) -> int:
    return (a + b - 1) // b * b


def _psnr_kernel(x_ref, y_ref, sum_ref, max_ref):
    step = pl.program_id(1)  # reduction axis for this core-slot

    @pl.when(step == 0)
    def _():
        sum_ref[...] = jnp.zeros_like(sum_ref)
        max_ref[...] = jnp.zeros_like(max_ref)  # x**2 >= 0, so 0 is a safe identity

    x = x_ref[...].astype(jnp.float32)
    y = y_ref[...].astype(jnp.float32)
    d = x - y
    # Hot loop is pure VPU elementwise accumulation; no per-step XLU reduce.
    sum_ref[...] = sum_ref[...] + d * d
    max_ref[...] = jnp.maximum(max_ref[...], x * x)


def psnr_loss(x: jax.Array, y: jax.Array) -> jax.Array:
    """Pallas implementation of PSNRLoss.forward: mean((X-Y)^2) / max(X^2)."""
    assert x.shape == y.shape, "X and Y must have the same shape"
    n = math.prod(x.shape)
    assert n > 0, "empty input"

    # Flatten to (rows, 128), rows a multiple of 8 (sublane tiling).
    rows = _round_up(pl.cdiv(n, _LANES), 8)
    tile_rows = min(_MAX_BLOCK_ROWS, rows)              # multiple of 8 by construction
    rows = _round_up(rows, _NUM_CORE_SLOTS * tile_rows)  # even split across core slots
    blocks_per_slot = rows // (_NUM_CORE_SLOTS * tile_rows)
    padded = rows * _LANES

    def _flatten(a):
        flat = a.reshape(-1)
        if padded != n:
            # Zero padding: contributes 0 to sum((X-Y)^2) and 0 <= max(X^2).
            flat = jnp.pad(flat, (0, padded - n))
        return flat.reshape(rows, _LANES)

    x2 = _flatten(x)
    y2 = _flatten(y)

    out_rows = _NUM_CORE_SLOTS * tile_rows
    in_spec = pl.BlockSpec(
        (tile_rows, _LANES), lambda c, s: (c * blocks_per_slot + s, 0)
    )
    out_spec = pl.BlockSpec((tile_rows, _LANES), lambda c, s: (c, 0))

    sum_out, max_out = pl.pallas_call(
        _psnr_kernel,
        out_shape=(
            jax.ShapeDtypeStruct((out_rows, _LANES), jnp.float32),
            jax.ShapeDtypeStruct((out_rows, _LANES), jnp.float32),
        ),
        grid_spec=pltpu.PrefetchScalarGridSpec(
            num_scalar_prefetch=0,
            grid=(_NUM_CORE_SLOTS, blocks_per_slot),
            in_specs=[in_spec, in_spec],
            out_specs=[out_spec, out_spec],
        ),
        compiler_params=pltpu.CompilerParams(
            dimension_semantics=("parallel", "arbitrary"),
        ),
    )(x2, y2)

    # Final (tiny) reductions + PSNR ratio in plain JAX.
    error_mse = jnp.sum(sum_out) / jnp.float32(n)
    self_max = jnp.max(max_out)
    return error_mse / self_max


if __name__ == "__main__":
    key = jax.random.PRNGKey(0)
    kx, ky = jax.random.split(key)

    # Small NCHW-like example.
    B, C, H, W = 2, 4, 16, 16
    X = jax.random.normal(kx, (B, C, H, W), dtype=jnp.float32)
    Y = jax.random.normal(ky, (B, C, H, W), dtype=jnp.float32)

    loss = psnr_loss(X, Y)
    jax.block_until_ready(loss)

    ref = jnp.mean(jnp.square(X - Y)) / jnp.max(jnp.square(X))
    assert jnp.allclose(loss, ref, rtol=1e-5, atol=1e-6), (loss, ref)

    # Non-128-multiple / odd-rank shape exercises the zero-padding path.
    kx2, ky2 = jax.random.split(ky)
    X2 = jax.random.normal(kx2, (3, 5, 7), dtype=jnp.float32)
    Y2 = jax.random.normal(ky2, (3, 5, 7), dtype=jnp.float32)
    loss2 = psnr_loss(X2, Y2)
    jax.block_until_ready(loss2)
    ref2 = jnp.mean(jnp.square(X2 - Y2)) / jnp.max(jnp.square(X2))
    assert jnp.allclose(loss2, ref2, rtol=1e-5, atol=1e-6), (loss2, ref2)

    print("KERNEL_OK")
</pallas_src>

<mosaic_0001>
module attributes {stable_mosaic.version = 11 : i64} {
  func.func @_psnr_kernel(%arg0: i32, %arg1: i32, %arg2: memref<16x128xf32, #tpu.memory_space<vmem>>, %arg3: memref<16x128xf32, #tpu.memory_space<vmem>>, %arg4: memref<16x128xf32, #tpu.memory_space<vmem>>, %arg5: memref<16x128xf32, #tpu.memory_space<vmem>>) attributes {dimension_semantics = [#tpu.dimension_semantics<parallel>, #tpu.dimension_semantics<arbitrary>], iteration_bounds = array<i64: 2, 1>, scalar_prefetch = 0 : i64, scratch_operands = 0 : i64, tpu.core_type = #tpu.core_type<tc>, window_params = [{transform_indices = @transform_0, window_bounds = array<i64: 16, 128>}, {transform_indices = @transform_1, window_bounds = array<i64: 16, 128>}, {transform_indices = @transform_2, window_bounds = array<i64: 16, 128>}, {transform_indices = @transform_3, window_bounds = array<i64: 16, 128>}]} {
    %c0_i32 = arith.constant 0 : i32
    %0 = arith.cmpi eq, %arg1, %c0_i32 : i32
    %1 = arith.extui %0 : i1 to i32
    %c0_i32_0 = arith.constant 0 : i32
    %2 = arith.cmpi ne, %1, %c0_i32_0 : i32
    scf.if %2 {
      %cst = arith.constant 0.000000e+00 : f32
      %14 = vector.broadcast %cst : f32 to vector<16x128xf32>
      %c0_12 = arith.constant 0 : index
      %c0_13 = arith.constant 0 : index
      %15 = vector.load %arg4[%c0_12, %c0_13] : memref<16x128xf32, #tpu.memory_space<vmem>>, vector<16x128xf32>
      tpu.vector_store %arg4[%c0_12, %c0_13], %14 {strides = array<i32>} : memref<16x128xf32, #tpu.memory_space<vmem>>, vector<16x128xf32>,
      %cst_14 = arith.constant 0.000000e+00 : f32
      %16 = vector.broadcast %cst_14 : f32 to vector<16x128xf32>
      %c0_15 = arith.constant 0 : index
      %c0_16 = arith.constant 0 : index
      %17 = vector.load %arg5[%c0_15, %c0_16] : memref<16x128xf32, #tpu.memory_space<vmem>>, vector<16x128xf32>
      tpu.vector_store %arg5[%c0_15, %c0_16], %16 {strides = array<i32>} : memref<16x128xf32, #tpu.memory_space<vmem>>, vector<16x128xf32>,
    } else {
    }
    %c0 = arith.constant 0 : index
    %c0_1 = arith.constant 0 : index
    %3 = vector.load %arg2[%c0, %c0_1] : memref<16x128xf32, #tpu.memory_space<vmem>>, vector<16x128xf32>
    %c0_2 = arith.constant 0 : index
    %c0_3 = arith.constant 0 : index
    %4 = vector.load %arg3[%c0_2, %c0_3] : memref<16x128xf32, #tpu.memory_space<vmem>>, vector<16x128xf32>
    %5 = arith.subf %3, %4 : vector<16x128xf32>
    %c0_4 = arith.constant 0 : index
    %c0_5 = arith.constant 0 : index
    %6 = vector.load %arg4[%c0_4, %c0_5] : memref<16x128xf32, #tpu.memory_space<vmem>>, vector<16x128xf32>
    %7 = arith.mulf %5, %5 : vector<16x128xf32>
    %8 = arith.addf %6, %7 : vector<16x128xf32>
    %c0_6 = arith.constant 0 : index
    %c0_7 = arith.constant 0 : index
    %9 = vector.load %arg4[%c0_6, %c0_7] : memref<16x128xf32, #tpu.memory_space<vmem>>, vector<16x128xf32>
    tpu.vector_store %arg4[%c0_6, %c0_7], %8 {strides = array<i32>} : memref<16x128xf32, #tpu.memory_space<vmem>>, vector<16x128xf32>,
    %c0_8 = arith.constant 0 : index
    %c0_9 = arith.constant 0 : index
    %10 = vector.load %arg5[%c0_8, %c0_9] : memref<16x128xf32, #tpu.memory_space<vmem>>, vector<16x128xf32>
    %11 = arith.mulf %3, %3 : vector<16x128xf32>
    %12 = arith.maximumf %10, %11 : vector<16x128xf32>
    %c0_10 = arith.constant 0 : index
    %c0_11 = arith.constant 0 : index
    %13 = vector.load %arg5[%c0_10, %c0_11] : memref<16x128xf32, #tpu.memory_space<vmem>>, vector<16x128xf32>
    tpu.vector_store %arg5[%c0_10, %c0_11], %12 {strides = array<i32>} : memref<16x128xf32, #tpu.memory_space<vmem>>, vector<16x128xf32>,
    return
  }
  func.func @transform_0(%arg0: i32, %arg1: i32) -> (i32, i32) {
    %c1_i32 = arith.constant 1 : i32
    %0 = arith.muli %arg0, %c1_i32 : i32
    %1 = arith.addi %0, %arg1 : i32
    %c0_i32 = arith.constant 0 : i32
    %c0_i32_0 = arith.constant 0 : i32
    return %1, %c0_i32 : i32, i32
  }
  func.func @transform_1(%arg0: i32, %arg1: i32) -> (i32, i32) {
    %c1_i32 = arith.constant 1 : i32
    %0 = arith.muli %arg0, %c1_i32 : i32
    %1 = arith.addi %0, %arg1 : i32
    %c0_i32 = arith.constant 0 : i32
    %c0_i32_0 = arith.constant 0 : i32
    return %1, %c0_i32 : i32, i32
  }
  func.func @transform_2(%arg0: i32, %arg1: i32) -> (i32, i32) {
    %c0_i32 = arith.constant 0 : i32
    %c0_i32_0 = arith.constant 0 : i32
    return %arg0, %c0_i32 : i32, i32
  }
  func.func @transform_3(%arg0: i32, %arg1: i32) -> (i32, i32) {
    %c0_i32 = arith.constant 0 : i32
    %c0_i32_0 = arith.constant 0 : i32
    return %arg0, %c0_i32 : i32, i32
  }
}

</mosaic_0001>

<bundles_post_ra>
// kernel: tpu_custom_call.1
= control target key start
LH: loop header
LB: loop body
LE: loop exit
PB: predicated region body
PF: predicated region fallthrough
CT: control target
= control target key end

     0   :  { %s991_s0 = inlined_call_operand.hbm [shape: f32[32,128], index: 0, kind: input, shape index: {}]   ;;  %s992_s1 = inlined_call_operand.hbm [shape: f32[32,128], index: 1, kind: input, shape index: {}]   ;;  %s993_s2 = inlined_call_operand.hbm [shape: f32[32,128], index: 2, kind: output, shape index: {0}]   ;;  %s994_s3 = inlined_call_operand.hbm [shape: f32[32,128], index: 3, kind: output, shape index: {1}]  }
   0x1   :  { %995 = sst [smem:[#allocation14_spill]] %s991_s0 }
   0x2   :  { %9 = vsyncpa [#allocation3], 0 }
   0x3   :  { %11 = vsyncpa [#allocation3 + $0x1], 0 }
   0x4   :  { %12 = vsyncpa [#allocation6], 0 }
   0x5   :  { %14 = vsyncpa [#allocation6 + $0x1], 0 }
   0x6   :  { %15 = vsyncpa [#allocation4], 0 }
   0x7   :  { %17 = vsyncpa [#allocation4 + $0x1], 0 }
   0x8   :  { %18 = vsyncpa [#allocation9], 0 }
   0x9   :  { %20 = vsyncpa [#allocation9 + $0x1], 0  ;;  %s771_s12 = smov 0   ;;  %s773_s13 = smov 0  }
   0xa   :  { %s775_s14 = smov 0   ;;  %s777_s15 = smov 0  }
   0xb   :  { %s779_s16 = smov 0   ;;  %s781_s17 = smov 0  }
   0xc LB: > { %s467_s18 = sadd.s32 4294967295, %s741_s17   ;;  %s468_s19 = sadd.s32 4294967294, %s741_s17   ;;  %s741_s17 = sphi %s781_s17, %s26_s17   ;;  %s737_s16 = sphi %s779_s16, %s1007_s16   ;;  %s733_s15 = sphi %s777_s15, %s1006_s15   ;;  %s729_s14 = sphi %s775_s14, %s1005_s14   ;;  %s725_s13 = sphi %s773_s13, %s1004_s13   ;;  %s721_s12 = sphi %s771_s12, %s1003_s12  }
   0xd   : > { %s38_s20 = sadd.s32 1, %s737_s16  ;;  %s47_s21 = sadd.s32 1, %s729_s14 }
   0xe   : > { %p40_p0 = scmp.ge.s32.totalorder %s38_s20, 2  ;;  %p54_p1 = scmp.ne.s32.totalorder %s729_s14, %s725_s13 }
   0xf   : > { %p55_p2 = scmp.eq.s32.totalorder %s741_s17, 0  ;;  %p60_p3 = scmp.ne.s32.totalorder %s725_s13, %s721_s12 }
  0x10   : > { %s1009_s20 = smov (%p40_p0, %s38_s20), 0  ;;  %p61_p5 = scmp.eq.s32.totalorder %s467_s18, 0 }
  0x11   : > { %p812_p4 = por %p55_p2, %p54_p1  ;;  %s44_s23 = ssub.s32 %s737_s16, %s1009_s20 }
  0x12   : > { %p112_p6 = scmp.eq.s32.totalorder %s467_s18, 1  ;;  %p45_p7 = scmp.eq.s32.totalorder %s44_s23, 0 }
  0x13   : > { %p818_p8 = por %p61_p5, %p60_p3  ;;  %p118_p10 = scmp.eq.s32.totalorder %s468_s19, 1 }
  0x14   : > { %p822_p9 = por %p112_p6, %p54_p1  ;;  %p470_p12 = scmp.ge.s32.totalorder %s741_s17, 2 }
  0x15   : > { %s827_s26 = scalar_select %p45_p7, %s729_s14, %s47_s21  }
  0x16   : > { %p829_p11 = por %p118_p10, %p60_p3  ;;  %p516_p13 = scmp.lt.s32.totalorder %s741_s17, 2 }
  0x17   : > { %s836_s28 = sand.u32 1, %s729_s14   ;;  %s490_s30 = sshll.u32 %s737_s16, 8 }
  0x18   : > { %s471_s29 = sshll.u32 %s836_s28, 4  ;;  %s1000_s0 = sld [smem:[#allocation14_spill]] }
  0x19   : > { %s168_s7 = scalar_lea.vmem [#allocation2], %s471_s29  ;;  %p849_p0 = pnand %p516_p13, %p812_p4 }
  0x1a   : > { %s176_s8 = sshll.u32 %s168_s7, 4  ;;  %p477_p1 = scmp.ge.s32.totalorder %s741_s17, 1  ;;  %s177_s8 = int_to_ptr.vmem [resolvable:$true] %s176_s8 }
  0x1b   : > { %s165_s10 = scalar_lea.sflag [#allocation3], %s836_s28  ;;  %p573_p2 = pneg %p849_p0 }
  0x1c   : > { %s584_s11 = scalar_lea.vmem %s177_s8, 256  ;;  %s743_s18 = smov [#allocation2]  }
  0x1d   : > { %p585_p3 = scmp.ne.s32.totalorder %s177_s8, %s584_s11  ;;  %s589_s19 = sshll.u32 %s743_s18, 4  ;;  %s590_s19 = int_to_ptr.vmem [resolvable:$false] %s589_s19 }
  0x1e   : > { %s175_s6 = scalar_lea.hbm %s1000_s0, %s490_s30  ;;  %s591_s21 = scalar_lea.vmem %s590_s19, 512 }
  0x1f   : > { %p587_p5 = pnand %p585_p3, %p573_p2  ;;  %p592_p4 = scmp.lt.s32.totalorder %s177_s8, %s590_s19 }
  0x20   : > { %p593_p7 = scmp.lt.s32.totalorder %s591_s21, %s584_s11 }
  0x21   : > { %p588_p6 = pneg %p587_p5 }
  0x22   : > { %p594_p10 = por %p593_p7, %p592_p4 }
  0x24   : > { %p595_p13 = pnand %p594_p10, %p588_p6 }
  0x26   : > { %598 = shalt.err (!%p595_p13)
}
  0x27   : > { %s744_s22 = smov 128   ;;  %s745_s23 = smov 8  }
  0x28   : > { %505 = dma.hbm_to_vmem [thread:$0]  (!%p849_p0), %s175_s6, 256, %s177_s8, %s165_s10, %s744_s22, %s744_s22, %s745_s23  }
  0x29   : > { %p206_p3 = scmp.lt.s32.totalorder %s741_s17, 3  ;;  %s197_s7 = scalar_lea.hbm %s992_s1, %s490_s30 }
  0x2a   : > { %s190_s18 = scalar_lea.vmem [#allocation5], %s471_s29  ;;  %s187_s21 = scalar_lea.sflag [#allocation6], %s836_s28 }
  0x2b   : > { %p870_p5 = pnand %p477_p1, %p206_p3  ;;  %s198_s19 = sshll.u32 %s190_s18, 4  ;;  %s199_s19 = int_to_ptr.vmem [resolvable:$true] %s198_s19 }
  0x2c   : > { %s612_s0 = scalar_lea.vmem %s199_s19, 256  ;;  %s746_s6 = smov [#allocation5]  }
  0x2d   : > { %p613_p6 = scmp.ne.s32.totalorder %s199_s19, %s612_s0  ;;  %s617_s8 = sshll.u32 %s746_s6, 4  ;;  %s618_s8 = int_to_ptr.vmem [resolvable:$false] %s617_s8 }
  0x2e   : > { %s619_s30 = scalar_lea.vmem %s618_s8, 512  ;;  %p620_p10 = scmp.lt.s32.totalorder %s199_s19, %s618_s8 }
  0x2f   : > { %p615_p4 = pnand %p613_p6, %p573_p2  ;;  %p621_p1 = scmp.lt.s32.totalorder %s619_s30, %s612_s0 }
  0x31   : > { %p616_p7 = pneg %p615_p4  ;;  %p622_p13 = por %p621_p1, %p620_p10 }
  0x33   : > { %p623_p3 = pnand %p622_p13, %p616_p7 }
  0x35   : > { %626 = shalt.err (!%p623_p3)
}
  0x36   : > { %508 = dma.hbm_to_vmem [thread:$0]  (!%p849_p0), %s197_s7, 256, %s199_s19, %s187_s21, %s744_s22, %s744_s22, %s745_s23  }
  0x37   : > { %210 = sbr.rel (%p870_p5) target bundleno = 111 (0x6f), region = 28  ;;  %s885_s28 = sand.u32 (!%p870_p5), 1, %s725_s13  }
  0x38   : > { %s478_s29 = sshll.u32 (!%p870_p5), %s885_s28, 4  ;;  %s213_s10 = scalar_lea.sflag (!%p870_p5), [#allocation3], %s885_s28 }
  0x39   : > { %s216_s4 = scalar_lea.vmem (!%p870_p5), [#allocation2], %s478_s29 }
  0x3c   : > { %704 = dma.done.wait (%p818_p8), %s213_s10, 256  }
  0x3d   : > { %706 = vsyncadd (%p818_p8), %s213_s10, 4294967040  ;;  %s222_s0 = scalar_lea.sflag [#allocation6], %s885_s28  ;;  %s225_s9 = scalar_lea.vmem [#allocation5], %s478_s29 }
  0x3e   : > { %708 = dma.done.wait (%p818_p8), %s222_s0, 256  }
  0x3f   : > { %710 = vsyncadd (%p818_p8), %s222_s0, 4294967040  ;;  %v272_v0 = vld [vmem:[%s216_s4] sm:$0xff]  ;;  %v273_v2 = vld [vmem:[%s216_s4 + $0x8] sm:$0xff]  ;;  %s492_s22 = sshll.u32 %s733_s15, 8  ;;  %s257_s23 = scalar_lea.vmem [#allocation8], %s478_s29 }
  0x40   : > { %v274_v1 = vld [vmem:[%s225_s9] sm:$0xff]  ;;  %s329_s5 = sshll.u32 %s257_s23, 4  ;;  %v275_v4 = vld [vmem:[%s225_s9 + $0x8] sm:$0xff]  ;;  %v288_v5 = vmul.f32 %v272_v0, %v272_v0  ;;  %v289_v6 = vmul.f32 %v273_v2, %v273_v2  ;;  %s899_s7 = scalar_lea.vmem [#allocation7], %s478_s29  ;;  %s907_s5 = int_to_ptr.vmem [resolvable:$true] %s329_s5 }
  0x41   : > { %v276_v3 = vsub.f32 %v272_v0, %v274_v1  ;;  %s313_s11 = sshll.u32 %s899_s7, 4  ;;  %v277_v7 = vsub.f32 %v273_v2, %v275_v4  ;;  %s905_s15 = scalar_lea.hbm %s994_s3, %s492_s22  ;;  %s914_s11 = int_to_ptr.vmem [resolvable:$true] %s313_s11 }
  0x42   : > { %v290_v9 = vmax.f32 %v288_v5, 0.0  ;;  %v291_v10 = vmax.f32 %v289_v6, 0.0  ;;  %s912_s6 = scalar_lea.hbm %s993_s2, %s492_s22  ;;  %s300_s8 = scalar_lea.sflag [#allocation9], %s885_s28 }
  0x43   : > { %v280_v8 = vmul.f32 %v276_v3, %v276_v3  ;;  %v281_v11 = vmul.f32 %v277_v7, %v277_v7  ;;  %s627_s30 = scalar_lea.vmem %s907_s5, 256  ;;  %s747_s29 = smov [#allocation8]  }
  0x44   : > { %292 = vst [vmem:[%s257_s23] sm:$0xff] %v290_v9  ;;  %293 = vst [vmem:[%s257_s23 + $0x8] sm:$0xff] %v291_v10  ;;  %p628_p8 = scmp.ne.s32.totalorder %s907_s5, %s627_s30  ;;  %s631_s10 = sshll.u32 %s747_s29, 4  ;;  %s632_s10 = int_to_ptr.vmem [resolvable:$false] %s631_s10 }
  0x45   : > { %s633_s4 = scalar_lea.vmem %s632_s10, 512  ;;  %p634_p5 = scmp.lt.s32.totalorder %s907_s5, %s632_s10 }
  0x46   : > { %p629_p0 = pnand %p628_p8, %p822_p9  ;;  %p635_p6 = scmp.lt.s32.totalorder %s633_s4, %s627_s30 }
  0x48   : > { %p630_p2 = pneg %p629_p0  ;;  %p636_p4 = por %p635_p6, %p634_p5 }
  0x4a   : > { %p637_p7 = pnand %p636_p4, %p630_p2 }
  0x4c   : > { %640 = shalt.err (!%p637_p7)
}
  0x4d   : > { %s641_s0 = scalar_lea.hbm %s905_s15, 256  ;;  %s645_s23 = scalar_lea.hbm %s994_s3, 512 }
  0x4e   : > { %p642_p10 = scmp.ne.s32.totalorder %s905_s15, %s641_s0  ;;  %p646_p3 = scmp.lt.s32.totalorder %s905_s15, %s994_s3 }
  0x4f   : > { %p647_p8 = scmp.lt.s32.totalorder %s645_s23, %s641_s0 }
  0x50   : > { %p643_p1 = pnand %p642_p10, %p822_p9 }
  0x51   : > { %p648_p0 = por %p647_p8, %p646_p3 }
  0x52   : > { %p644_p13 = pneg %p643_p1 }
  0x54   : > { %p649_p2 = pnand %p648_p0, %p644_p13 }
  0x56   : > { %652 = shalt.err (!%p649_p2)
}
  0x57   : > { %s748_s19 = smov 128   ;;  %s749_s21 = smov 8   ;;  %284 = vst [vmem:[%s899_s7] sm:$0xff] %v280_v8  ;;  %285 = vst [vmem:[%s899_s7 + $0x8] sm:$0xff] %v281_v11 }
  0x58   : > { %499 = dma.vmem_to_hbm [thread:$0]  (%p822_p9), %s907_s5, 256, %s905_s15, %s300_s8, %s748_s19, %s748_s19, %s749_s21  }
  0x59   : > { %s295_s30 = scalar_lea.sflag [#allocation4], %s885_s28  ;;  %s653_s29 = scalar_lea.vmem %s914_s11, 256 }
  0x5a   : > { %p654_p5 = scmp.ne.s32.totalorder %s914_s11, %s653_s29  ;;  %s750_s10 = smov [#allocation7]  }
  0x5b   : > { %s657_s4 = sshll.u32 %s750_s10, 4  ;;  %s658_s4 = int_to_ptr.vmem [resolvable:$false] %s657_s4 }
  0x5c   : > { %p655_p6 = pnand %p654_p5, %p822_p9  ;;  %s659_s0 = scalar_lea.vmem %s658_s4, 512 }
  0x5d   : > { %p660_p7 = scmp.lt.s32.totalorder %s914_s11, %s658_s4  ;;  %p661_p10 = scmp.lt.s32.totalorder %s659_s0, %s653_s29 }
  0x5e   : > { %p656_p4 = pneg %p655_p6 }
  0x5f   : > { %p662_p1 = por %p661_p10, %p660_p7 }
  0x61   : > { %p663_p13 = pnand %p662_p1, %p656_p4 }
  0x63   : > { %666 = shalt.err (!%p663_p13)
}
  0x64   : > { %s667_s5 = scalar_lea.hbm %s912_s6, 256  ;;  %s671_s15 = scalar_lea.hbm %s993_s2, 512 }
  0x65   : > { %p668_p3 = scmp.ne.s32.totalorder %s912_s6, %s667_s5  ;;  %p672_p2 = scmp.lt.s32.totalorder %s912_s6, %s993_s2 }
  0x66   : > { %p673_p5 = scmp.lt.s32.totalorder %s671_s15, %s667_s5 }
  0x67   : > { %p669_p8 = pnand %p668_p3, %p822_p9 }
  0x68   : > { %p674_p6 = por %p673_p5, %p672_p2 }
  0x69   : > { %p670_p0 = pneg %p669_p8 }
  0x6b   : > { %p675_p4 = pnand %p674_p6, %p670_p0 }
  0x6d   : > { %678 = shalt.err (!%p675_p4)
}
  0x6e   : > { %498 = dma.vmem_to_hbm [thread:$0]  (%p822_p9), %s914_s11, 256, %s912_s6, %s295_s30, %s748_s19, %s748_s19, %s749_s21  }
  0x6f PF: > { %s344_s22 = sand.u32 1, %s721_s12   ;;  %p510_p7 = pnand %p470_p12, %p829_p11 }
  0x70   : > { %s345_s23 = scalar_lea.sflag [#allocation4], %s344_s22 }
  0x71   : > { %p511_p10 = pneg %p510_p7 }
  0x73   : > { %712 = dma.done.wait (%p511_p10), %s345_s23, 256  }
  0x74   : > { %714 = vsyncadd (%p511_p10), %s345_s23, 4294967040  ;;  %s354_s24 = scalar_lea.sflag [#allocation9], %s344_s22 }
  0x75   : > { %716 = dma.done.wait (%p511_p10), %s354_s24, 256  }
  0x76   : > { %718 = vsyncadd (%p511_p10), %s354_s24, 4294967040  ;;  %s26_s17 = sadd.s32 1, %s741_s17   ;;  %s1003_s12 = smov %s725_s13 }
  0x77   : > { %p23_p1 = scmp.ge.s32.totalorder %s26_s17, 4   ;;  %s1004_s13 = smov %s729_s14 }
  0x78   : > { %s1005_s14 = smov %s827_s26  ;;  %s1006_s15 = smov %s737_s16 }
  0x79   : > { %s1007_s16 = smov %s1009_s20  ;;  %25 = sbr.rel (!%p23_p1) target bundleno = 12 (0xc), region = 107 }
  0x7e   :  { %359 = vsyncpa [#allocation3], 1 }
  0x7f   :  { %361 = vsyncpa [#allocation3 + $0x1], 1 }
  0x80   :  { %362 = vsyncpa [#allocation6], 1 }
  0x81   :  { %364 = vsyncpa [#allocation6 + $0x1], 1 }
  0x82   :  { %365 = vsyncpa [#allocation4], 1 }
  0x83   :  { %367 = vsyncpa [#allocation4 + $0x1], 1 }
  0x84   :  { %368 = vsyncpa [#allocation9], 1 }
  0x85   :  { %370 = vsyncpa [#allocation9 + $0x1], 1 }

</bundles_post_ra>
